<compile_context>
chip_gen: v7x
topology: tpu7x:2x2x1
jax: 0.10.0
libtpu: 0.0.40
codegen_flags: <defaults>
</compile_context>

<pallas_src>
import jax
import jax.numpy as jnp
from jax.experimental import pallas as pl
from jax.experimental.pallas import tpu as pltpu


def dqn_kernel(xT_ref, w1_ref, b1_ref, w2_ref, b2_ref, w3_ref, b3_ref, o_ref):
    # xT_ref: [state_dim, TILE_B] bf16 ; weights: [out, in] bf16 ; biases [out, 1] f32
    x = xT_ref[...]
    # Layer 1: Linear(state_dim -> 64) + ReLU   (f32 accumulate on the MXU)
    h1 = jnp.dot(w1_ref[...], x, preferred_element_type=jnp.float32)
    h1 = jnp.maximum(h1 + b1_ref[...], 0.0)
    # Layer 2: Linear(64 -> 64) + ReLU
    h2 = jnp.dot(w2_ref[...], h1.astype(jnp.bfloat16),
                 preferred_element_type=jnp.float32)
    h2 = jnp.maximum(h2 + b2_ref[...], 0.0)
    # Layer 3: Linear(64 -> action_dim), no activation
    out = jnp.dot(w3_ref[...], h2.astype(jnp.bfloat16),
                  preferred_element_type=jnp.float32)
    o_ref[...] = (out + b3_ref[...]).astype(o_ref.dtype)


def _round_up(v, m):
    return ((v + m - 1) // m) * m


def dqn_forward(x, params, *, tile_b=512, min_pallas_batch=256):
    """DQNNet forward.

    x:      [B, state_dim] float32
    params: PyTorch-layout weights: w1 [64, state_dim], w2 [64, 64],
            w3 [action_dim, 64]; biases as columns: b1/b2 [64, 1],
            b3 [action_dim, 1]; all float32.
    returns [B, action_dim] float32
    """
    B, state_dim = x.shape
    action_dim = params["w3"].shape[0]

    # Tiny acting/inference batches: fixed pallas_call overhead dominates the
    # ~50 KFLOP of compute -- use the fused XLA path instead.
    if B < min_pallas_batch:
        return dqn_reference(x, params)

    # Batch on the lane axis, bf16 operands for the MXU.
    xT = x.T.astype(jnp.bfloat16)                      # [state_dim, B]
    w1 = params["w1"].astype(jnp.bfloat16)
    w2 = params["w2"].astype(jnp.bfloat16)
    w3 = params["w3"].astype(jnp.bfloat16)
    b1, b2, b3 = params["b1"], params["b2"], params["b3"]   # f32 [out, 1]

    # Tile the batch; pad it up to a multiple of the tile so every block is
    # full-width (unmasked lane-dense stores) and VMEM stays O(TILE_B).
    tile_b_eff = min(tile_b, _round_up(B, 128))
    Bp = _round_up(B, tile_b_eff)
    if Bp != B:
        xT = jnp.pad(xT, ((0, 0), (0, Bp - B)))
    grid = (Bp // tile_b_eff,)

    full = lambda a: pl.BlockSpec(a.shape, lambda i: (0,) * a.ndim)

    outT = pl.pallas_call(
        dqn_kernel,
        out_shape=jax.ShapeDtypeStruct((action_dim, Bp), jnp.float32),
        grid=grid,
        in_specs=[
            pl.BlockSpec((state_dim, tile_b_eff), lambda i: (0, i)),  # x tile
            full(w1), full(b1),                                       # resident
            full(w2), full(b2),
            full(w3), full(b3),
        ],
        out_specs=pl.BlockSpec((action_dim, tile_b_eff), lambda i: (0, i)),
        compiler_params=pltpu.CompilerParams(
            dimension_semantics=("parallel",)),                       # v7x megacore
    )(xT, w1, b1, w2, b2, w3, b3)

    return outT[:, :B].T                                              # [B, action_dim]


def init_params(key, state_dim, action_dim):
    """PyTorch-default-like init, stored in PyTorch [out, in] layout."""
    ks = jax.random.split(key, 6)

    def lin(kw, kb, fan_in, fan_out):
        bound = 1.0 / jnp.sqrt(jnp.float32(fan_in))
        w = jax.random.uniform(kw, (fan_out, fan_in), jnp.float32, -bound, bound)
        b = jax.random.uniform(kb, (fan_out, 1), jnp.float32, -bound, bound)
        return w, b

    w1, b1 = lin(ks[0], ks[1], state_dim, 64)
    w2, b2 = lin(ks[2], ks[3], 64, 64)
    w3, b3 = lin(ks[4], ks[5], 64, action_dim)
    return {"w1": w1, "b1": b1, "w2": w2, "b2": b2, "w3": w3, "b3": b3}


def dqn_reference(x, p):
    """Pure-f32 XLA reference (also the small-batch fast path)."""
    h1 = jnp.maximum(x @ p["w1"].T + p["b1"].T, 0.0)
    h2 = jnp.maximum(h1 @ p["w2"].T + p["b2"].T, 0.0)
    return h2 @ p["w3"].T + p["b3"].T


def dqn_reference_bf16(x, p):
    """Reference that mirrors the kernel's bf16-operand / f32-accumulate math."""
    c = lambda a: a.astype(jnp.bfloat16).astype(jnp.float32)
    h1 = jnp.maximum(c(x) @ c(p["w1"]).T + p["b1"].T, 0.0)
    h2 = jnp.maximum(c(h1) @ c(p["w2"]).T + p["b2"].T, 0.0)
    return c(h2) @ c(p["w3"]).T + p["b3"].T


if __name__ == "__main__":
    key = jax.random.PRNGKey(0)
    k_param, k_x = jax.random.split(key)

    state_dim, action_dim = 16, 4
    params = init_params(k_param, state_dim, action_dim)

    # Training-style batch: exercises the tiled Pallas kernel (grid of 2 steps).
    B = 1024
    x = jax.random.normal(k_x, (B, state_dim), jnp.float32)
    out = jax.block_until_ready(dqn_forward(x, params, tile_b=512))
    assert out.shape == (B, action_dim)
    assert jnp.allclose(out, dqn_reference_bf16(x, params), atol=1e-3, rtol=1e-3)
    assert jnp.allclose(out, dqn_reference(x, params), atol=5e-2, rtol=5e-2)

    # Tiny acting batch: routed to the plain XLA path (kernel overhead dominates).
    x_small = jax.random.normal(k_x, (8, state_dim), jnp.float32)
    out_small = jax.block_until_ready(dqn_forward(x_small, params))
    assert jnp.allclose(out_small, dqn_reference(x_small, params),
                        atol=1e-4, rtol=1e-4)

    print("KERNEL_OK")
</pallas_src>

<mosaic_0001>
module attributes {stable_mosaic.version = 11 : i64} {
  func.func @dqn_kernel(%arg0: i32, %arg1: memref<16x512xbf16, #tpu.memory_space<vmem>>, %arg2: memref<64x16xbf16, #tpu.memory_space<vmem>>, %arg3: memref<64x1xf32, #tpu.memory_space<vmem>>, %arg4: memref<64x64xbf16, #tpu.memory_space<vmem>>, %arg5: memref<64x1xf32, #tpu.memory_space<vmem>>, %arg6: memref<4x64xbf16, #tpu.memory_space<vmem>>, %arg7: memref<4x1xf32, #tpu.memory_space<vmem>>, %arg8: memref<4x512xf32, #tpu.memory_space<vmem>>) attributes {dimension_semantics = [#tpu.dimension_semantics<parallel>], iteration_bounds = array<i64: 2>, scalar_prefetch = 0 : i64, scratch_operands = 0 : i64, tpu.core_type = #tpu.core_type<tc>, window_params = [{transform_indices = @transform_0, window_bounds = array<i64: 16, 512>}, {pipeline_mode = #tpu.pipeline_mode<synchronous>, transform_indices = @transform_1, window_bounds = array<i64: 64, 16>}, {pipeline_mode = #tpu.pipeline_mode<synchronous>, transform_indices = @transform_2, window_bounds = array<i64: 64, 1>}, {pipeline_mode = #tpu.pipeline_mode<synchronous>, transform_indices = @transform_3, window_bounds = array<i64: 64, 64>}, {pipeline_mode = #tpu.pipeline_mode<synchronous>, transform_indices = @transform_4, window_bounds = array<i64: 64, 1>}, {pipeline_mode = #tpu.pipeline_mode<synchronous>, transform_indices = @transform_5, window_bounds = array<i64: 4, 64>}, {pipeline_mode = #tpu.pipeline_mode<synchronous>, transform_indices = @transform_6, window_bounds = array<i64: 4, 1>}, {transform_indices = @transform_7, window_bounds = array<i64: 4, 512>}]} {
    %c0 = arith.constant 0 : index
    %c0_0 = arith.constant 0 : index
    %0 = vector.load %arg1[%c0, %c0_0] : memref<16x512xbf16, #tpu.memory_space<vmem>>, vector<16x512xbf16>
    %c0_1 = arith.constant 0 : index
    %c0_2 = arith.constant 0 : index
    %1 = vector.load %arg2[%c0_1, %c0_2] : memref<64x16xbf16, #tpu.memory_space<vmem>>, vector<64x16xbf16>
    %cst = arith.constant dense<0.000000e+00> : vector<64x512xf32>
    %2 = tpu.matmul %1, %0, %cst {dimension_numbers = #tpu.dot_dimension_numbers<[1], [0], [0], [1], [0, 0, 1, 1], [], []>} : vector<64x16xbf16>, vector<16x512xbf16>, vector<64x512xf32> -> vector<64x512xf32>
    %c0_3 = arith.constant 0 : index
    %c0_4 = arith.constant 0 : index
    %3 = vector.load %arg3[%c0_3, %c0_4] : memref<64x1xf32, #tpu.memory_space<vmem>>, vector<64x1xf32>
    %4 = vector.broadcast %3 : vector<64x1xf32> to vector<64x512xf32>
    %5 = arith.addf %2, %4 : vector<64x512xf32>
    %cst_5 = arith.constant 0.000000e+00 : f32
    %6 = vector.broadcast %cst_5 : f32 to vector<64x512xf32>
    %7 = arith.maximumf %5, %6 : vector<64x512xf32>
    %c0_6 = arith.constant 0 : index
    %c0_7 = arith.constant 0 : index
    %8 = vector.load %arg4[%c0_6, %c0_7] : memref<64x64xbf16, #tpu.memory_space<vmem>>, vector<64x64xbf16>
    %9 = arith.truncf %7 : vector<64x512xf32> to vector<64x512xbf16>
    %cst_8 = arith.constant dense<0.000000e+00> : vector<64x512xf32>
    %10 = tpu.matmul %8, %9, %cst_8 {dimension_numbers = #tpu.dot_dimension_numbers<[1], [0], [0], [1], [0, 0, 1, 1], [], []>} : vector<64x64xbf16>, vector<64x512xbf16>, vector<64x512xf32> -> vector<64x512xf32>
    %c0_9 = arith.constant 0 : index
    %c0_10 = arith.constant 0 : index
    %11 = vector.load %arg5[%c0_9, %c0_10] : memref<64x1xf32, #tpu.memory_space<vmem>>, vector<64x1xf32>
    %12 = vector.broadcast %11 : vector<64x1xf32> to vector<64x512xf32>
    %13 = arith.addf %10, %12 : vector<64x512xf32>
    %cst_11 = arith.constant 0.000000e+00 : f32
    %14 = vector.broadcast %cst_11 : f32 to vector<64x512xf32>
    %15 = arith.maximumf %13, %14 : vector<64x512xf32>
    %c0_12 = arith.constant 0 : index
    %c0_13 = arith.constant 0 : index
    %16 = vector.load %arg6[%c0_12, %c0_13] : memref<4x64xbf16, #tpu.memory_space<vmem>>, vector<4x64xbf16>
    %17 = arith.truncf %15 : vector<64x512xf32> to vector<64x512xbf16>
    %cst_14 = arith.constant dense<0.000000e+00> : vector<4x512xf32>
    %18 = tpu.matmul %16, %17, %cst_14 {dimension_numbers = #tpu.dot_dimension_numbers<[1], [0], [0], [1], [0, 0, 1, 1], [], []>} : vector<4x64xbf16>, vector<64x512xbf16>, vector<4x512xf32> -> vector<4x512xf32>
    %c0_15 = arith.constant 0 : index
    %c0_16 = arith.constant 0 : index
    %19 = vector.load %arg7[%c0_15, %c0_16] : memref<4x1xf32, #tpu.memory_space<vmem>>, vector<4x1xf32>
    %20 = vector.broadcast %19 : vector<4x1xf32> to vector<4x512xf32>
    %21 = arith.addf %18, %20 : vector<4x512xf32>
    %c0_17 = arith.constant 0 : index
    %c0_18 = arith.constant 0 : index
    %22 = vector.load %arg8[%c0_17, %c0_18] : memref<4x512xf32, #tpu.memory_space<vmem>>, vector<4x512xf32>
    tpu.vector_store %arg8[%c0_17, %c0_18], %21 {strides = array<i32>} : memref<4x512xf32, #tpu.memory_space<vmem>>, vector<4x512xf32>,
    return
  }
  func.func @transform_0(%arg0: i32) -> (i32, i32) {
    %c0_i32 = arith.constant 0 : i32
    %c0_i32_0 = arith.constant 0 : i32
    return %c0_i32, %arg0 : i32, i32
  }
  func.func @transform_1(%arg0: i32) -> (i32, i32) {
    %c0_i32 = arith.constant 0 : i32
    %c0_i32_0 = arith.constant 0 : i32
    %c0_i32_1 = arith.constant 0 : i32
    return %c0_i32, %c0_i32_0 : i32, i32
  }
  func.func @transform_2(%arg0: i32) -> (i32, i32) {
    %c0_i32 = arith.constant 0 : i32
    %c0_i32_0 = arith.constant 0 : i32
    %c0_i32_1 = arith.constant 0 : i32
    return %c0_i32, %c0_i32_0 : i32, i32
  }
  func.func @transform_3(%arg0: i32) -> (i32, i32) {
    %c0_i32 = arith.constant 0 : i32
    %c0_i32_0 = arith.constant 0 : i32
    %c0_i32_1 = arith.constant 0 : i32
    return %c0_i32, %c0_i32_0 : i32, i32
  }
  func.func @transform_4(%arg0: i32) -> (i32, i32) {
    %c0_i32 = arith.constant 0 : i32
    %c0_i32_0 = arith.constant 0 : i32
    %c0_i32_1 = arith.constant 0 : i32
    return %c0_i32, %c0_i32_0 : i32, i32
  }
  func.func @transform_5(%arg0: i32) -> (i32, i32) {
    %c0_i32 = arith.constant 0 : i32
    %c0_i32_0 = arith.constant 0 : i32
    %c0_i32_1 = arith.constant 0 : i32
    return %c0_i32, %c0_i32_0 : i32, i32
  }
  func.func @transform_6(%arg0: i32) -> (i32, i32) {
    %c0_i32 = arith.constant 0 : i32
    %c0_i32_0 = arith.constant 0 : i32
    %c0_i32_1 = arith.constant 0 : i32
    return %c0_i32, %c0_i32_0 : i32, i32
  }
  func.func @transform_7(%arg0: i32) -> (i32, i32) {
    %c0_i32 = arith.constant 0 : i32
    %c0_i32_0 = arith.constant 0 : i32
    return %c0_i32, %arg0 : i32, i32
  }
}

</mosaic_0001>

<bundles_post_ra>
// kernel: tpu_custom_call.1
= control target key start
LH: loop header
LB: loop body
LE: loop exit
PB: predicated region body
PF: predicated region fallthrough
CT: control target
= control target key end

     0   :  { %12 = vsyncpa [#allocation4], 0  ;;  %s1512_s0 = inlined_call_operand.vmem [shape: bf16[16,1024], index: 0, kind: input, shape index: {}]   ;;  %s1513_s1 = inlined_call_operand.vmem [shape: bf16[64,16], index: 1, kind: input, shape index: {}]   ;;  %s1514_s2 = inlined_call_operand.vmem [shape: f32[64,1], index: 2, kind: input, shape index: {}]   ;;  %s1515_s3 = inlined_call_operand.vmem [shape: bf16[64,64], index: 3, kind: input, shape index: {}]   ;;  %s1516_s4 = inlined_call_operand.vmem [shape: f32[64,1], index: 4, kind: input, shape index: {}]   ;;  %s1517_s5 = inlined_call_operand.vmem [shape: bf16[4,64], index: 5, kind: input, shape index: {}]   ;;  %s1518_s6 = inlined_call_operand.vmem [shape: f32[4,1], index: 6, kind: input, shape index: {}]   ;;  %s1519_s7 = inlined_call_operand.hbm [shape: f32[4,1024], index: 7, kind: output, shape index: {}]  }
   0x1   :  { %14 = vsyncpa [#allocation4 + $0x1], 0  ;;  %s1286_s24 = smov 0   ;;  %s1288_s25 = smov 0  }
   0x2   :  { %s1290_s26 = smov 0   ;;  %s1292_s27 = smov 0  }
   0x3 LB: > { %s1077_s28 = sadd.s32 4294967295, %s1242_s27   ;;  %s1078_s29 = sadd.s32 4294967294, %s1242_s27   ;;  %s1242_s27 = sphi %s1292_s27, %s1525_s27   ;;  %s1238_s26 = sphi %s1290_s26, %s1524_s26   ;;  %s1234_s25 = sphi %s1288_s25, %s1523_s25   ;;  %s1230_s24 = sphi %s1286_s24, %s1522_s24  }
   0x4   : > { %s1309_s30 = sadd.s32 1, %s1242_s27   ;;  %s27_s8 = sadd.s32 1, %s1238_s26 }
   0x5   : > { %s24_s9 = ssub.s32 %s1242_s27, %s1309_s30  ;;  %p34_p0 = scmp.ne.s32.totalorder %s1238_s26, %s1234_s25 }
   0x6   : > { %p25_p1 = scmp.eq.s32.totalorder %s24_s9, 0  ;;  %p35_p2 = scmp.eq.s32.totalorder %s1242_s27, 0 }
   0x7   : > { %p190_p3 = scmp.eq.s32.totalorder %s1077_s28, 1  ;;  %p195_p4 = scmp.ne.s32.totalorder %s1234_s25, %s1230_s24 }
   0x8   : > { %s1322_s10 = scalar_select %p25_p1, %s1238_s26, %s27_s8  }
   0x9   : > { %p36_p5 = por %p35_p2, %p34_p0  ;;  %p1324_p6 = por %p190_p3, %p34_p0 }
   0xa   : > { %p196_p7 = scmp.eq.s32.totalorder %s1078_s29, 1  ;;  %p1080_p9 = scmp.ge.s32.totalorder %s1242_s27, 2 }
   0xc   : > { %p1328_p8 = por %p196_p7, %p195_p4  ;;  %230 = sbr.rel (%p1080_p9) target bundleno = 26 (0x1a), region = 40 }
  0x13   : > { %233 = sbr.rel (!%p36_p5) target bundleno = 26 (0x1a), region = 44  ;;  %s235_s13 = sand.u32 (%p36_p5), 1, %s1238_s26  }
  0x14   : > { %s1122_s14 = sshll.u32 (%p36_p5), %s1242_s27, 4  ;;  %s1081_s15 = sshll.u32 (%p36_p5), %s235_s13, 5 }
  0x15   : > { %s240_s18 = scalar_lea.vmem (%p36_p5), %s1512_s0, %s1122_s14  ;;  %s237_s19 = scalar_lea.vmem (%p36_p5), [#allocation2], %s1081_s15 }
  0x16   : > { %v253_v0 = vld [vmem:[%s240_s18] sm:$0xff] (%p36_p5)  ;;  %v255_v1 = vld [vmem:[%s240_s18 + $0x8] sm:$0xff] (%p36_p5) }
  0x17   : > { %v257_v2 = vld [vmem:[%s240_s18 + $0x20] sm:$0xff] (%p36_p5)  ;;  %254 = vst [vmem:[%s237_s19] sm:$0xff] (%p36_p5), %v253_v0  ;;  %256 = vst [vmem:[%s237_s19 + $0x8] sm:$0xff] (%p36_p5), %v255_v1  ;;  %v259_v3 = vld [vmem:[%s240_s18 + $0x28] sm:$0xff] (%p36_p5) }
  0x18   : > { %258 = vst [vmem:[%s237_s19 + $0x10] sm:$0xff] (%p36_p5), %v257_v2  ;;  %260 = vst [vmem:[%s237_s19 + $0x18] sm:$0xff] (%p36_p5), %v259_v3 }
  0x1a PF: > { %p1084_p10 = scmp.ge.s32.totalorder %s1242_s27, 1  ;;  %p265_p11 = scmp.lt.s32.totalorder %s1242_s27, 3 }
  0x1c   : > { %p266_p12 = pnand %p1084_p10, %p265_p11 }
  0x1d   : > { %s1343_s20 = sand.u32 (!%p266_p12), 1, %s1234_s25   ;;  %v1244_v4 = vmov (!%p266_p12), 0   ;;  %v1172_v9 = vld [vmem:[%s1513_s1] sm:$0xff] (!%p266_p12)   ;;  %vm406_vm0 = vcmask (!%p266_p12), 130048   ;;  %v320_v11 = vld [vmem:[%s1514_s2 + $0x10] sm:$0xff] (!%p266_p12)  ;;  %v319_v12 = vld [vmem:[%s1514_s2 + $0x8] sm:$0xff] (!%p266_p12) }
  0x1e   : > { %269 = sbr.rel (%p266_p12) target bundleno = 766 (0x2fe), region = 67  ;;  %s1085_s21 = sshll.u32 (!%p266_p12), %s1343_s20, 5  ;;  %451 = vmatprep.mubr.bf16.mxu0 (!%p266_p12), %v1244_v4  ;;  %524 = vmatprep.mubr.bf16.mxu1 (!%p266_p12), %v1244_v4  ;;  %v318_v10 = vld [vmem:[%s1514_s2] sm:$0xff] (!%p266_p12)  ;;  %v321_v13 = vld [vmem:[%s1514_s2 + $0x18] sm:$0xff] (!%p266_p12)  ;;  %v1173_v14 = vld [vmem:[%s1513_s1 + $0x8] sm:$0xff] (!%p266_p12)   ;;  %vm689_vm1 = vcmask (!%p266_p12), 523264  }
  0x1f   : > { %1164 = vset.pattern.permute.xlu0 (!%p266_p12), %v1244_v4  ;;  %1165 = vset.pattern.permute.xlu1 (!%p266_p12), %v1244_v4  ;;  %s274_s22 = scalar_lea.vmem (!%p266_p12), [#allocation2], %s1085_s21  ;;  %v322_v15 = vld [vmem:[%s1514_s2 + $0x20] sm:$0xff] (!%p266_p12)  ;;  %v323_v16 = vld [vmem:[%s1514_s2 + $0x28] sm:$0xff] (!%p266_p12)  ;;  %v324_v17 = vld [vmem:[%s1514_s2 + $0x30] sm:$0xff] (!%p266_p12)  ;;  %s1086_s23 = sshll.u32 (!%p266_p12), %s1343_s20, 4 }
  0x20   : > { %v1166_v5 = vld [vmem:[%s274_s22 + $0x4] ss:$16 sps:$4 sm:$0xff] (!%p266_p12)   ;;  %v1168_v6 = vld [vmem:[%s274_s22 + $0xc] ss:$16 sps:$4 sm:$0xff] (!%p266_p12)   ;;  %v1170_v7 = vld [vmem:[%s274_s22] ss:$16 sps:$4 sm:$0xff] (!%p266_p12)   ;;  %328 = vperm.xlu0 (!%p266_p12), %1164, %v318_v10   ;;  %338 = vperm.xlu1 (!%p266_p12), %1165, %v320_v11  }
  0x21   : > { %419 = vmatprep.subr.bf16.mxu0 (!%p266_p12), %v1166_v5  ;;  %v1171_v8 = vld [vmem:[%s274_s22 + $0x8] ss:$16 sps:$4 sm:$0xff] (!%p266_p12)   ;;  %492 = vmatprep.subr.bf16.mxu1 (!%p266_p12), %v1168_v6  ;;  %v621_v19 = vld [vmem:[%s1516_s4] sm:$0xff] (!%p266_p12)  ;;  %v1174_v20 = vld [vmem:[%s1513_s1 + $0x10] sm:$0xff] (!%p266_p12)   ;;  %s1123_s29 = sshll.u32 (!%p266_p12), %s1077_s28, 8  ;;  %s302_s8 = scalar_lea.vmem (!%p266_p12), [#allocation3], %s1086_s23 }
  0x22   : > { %420 = vmatpush1.bf16.msra.mxu0 (!%p266_p12), %v1170_v7  ;;  %493 = vmatpush1.bf16.msra.mxu1 (!%p266_p12), %v1171_v8  ;;  %v325_v18 = vld [vmem:[%s1514_s2 + $0x38] sm:$0xff] (!%p266_p12)  ;;  %v622_v21 = vld [vmem:[%s1516_s4 + $0x8] sm:$0xff] (!%p266_p12)  ;;  %v623_v22 = vld [vmem:[%s1516_s4 + $0x10] sm:$0xff] (!%p266_p12)  ;;  %s1013_s9 = sshll.u32 (!%p266_p12), %s302_s8, 4  ;;  %s1468_s15 = scalar_lea.hbm (!%p266_p12), %s1519_s7, %s1123_s29  ;;  %s1470_s9 = int_to_ptr.vmem [resolvable:$true] %s1013_s9 }
  0x23   : > { %v624_v23 = vld [vmem:[%s1516_s4 + $0x18] sm:$0xff] (!%p266_p12)  ;;  %v625_v24 = vld [vmem:[%s1516_s4 + $0x20] sm:$0xff] (!%p266_p12)  ;;  %v626_v26 = vld [vmem:[%s1516_s4 + $0x28] sm:$0xff] (!%p266_p12)  ;;  %s999_s28 = scalar_lea.sflag (!%p266_p12), [#allocation4], %s1343_s20  ;;  %s1180_s16 = scalar_lea.vmem (!%p266_p12), %s1470_s9, 256 }
  0x24   : > { %333 = vperm.xlu0 (!%p266_p12), %1164, %v319_v12   ;;  %343 = vperm.xlu1 (!%p266_p12), %1165, %v321_v13   ;;  %v1175_v25 = vld [vmem:[%s1513_s1 + $0x18] sm:$0xff] (!%p266_p12)   ;;  %v627_v27 = vld [vmem:[%s1516_s4 + $0x30] sm:$0xff] (!%p266_p12)  ;;  %v897_v29 = vld [vmem:[%s1518_s6] sm:$0xf] (!%p266_p12)  ;;  %p1181_p13 = scmp.ne.s32.totalorder (!%p266_p12), %s1470_s9, %s1180_s16  ;;  %s1245_s17 = smov (!%p266_p12), [#allocation3]  }
  0x25   : > { %1095 = vmatmul.mubr.msk.bf16.vlgmr.msra.gmra.mrb[0].mxu0 %vm406_vm0, %v1172_v9  ;;  %1099 = vmatmul.mubr.msk.bf16.vlgmr.msra.gmra.mrb[0].mxu1 %vm406_vm0, %v1172_v9  ;;  %v628_v28 = vld [vmem:[%s1516_s4 + $0x38] sm:$0xff]  ;;  %s1184_s18 = sshll.u32 %s1245_s17, 4  ;;  %s1185_s18 = int_to_ptr.vmem [resolvable:$false] %s1184_s18 }
  0x26   : > { %461 = vmatprep.mubr.bf16.mxu0 %v1244_v4  ;;  %534 = vmatprep.mubr.bf16.mxu1 %v1244_v4  ;;  %p1182_p0 = pnand %p1181_p13, %p1324_p6  ;;  %s1186_s19 = scalar_lea.vmem %s1185_s18, 512 }
  0x27   : > { %p1187_p2 = scmp.lt.s32.totalorder %s1470_s9, %s1185_s18  ;;  %p1188_p3 = scmp.lt.s32.totalorder %s1186_s19, %s1180_s16 }
  0x28   : > { %348 = vperm.xlu0 %1164, %v322_v15   ;;  %353 = vperm.xlu1 %1165, %v323_v16   ;;  %p1183_p1 = pneg %p1182_p0 }
  0x29   : > { %p1189_p4 = por %p1188_p3, %p1187_p2 }
  0x2b   : > { %p1190_p5 = pnand %p1189_p4, %p1183_p1 }
  0x2c   : > { %358 = vperm.xlu0 %1164, %v324_v17   ;;  %363 = vperm.xlu1 %1165, %v325_v18  }
  0x2d   : > { %1096 = vmatmul.mubr.msk.bf16.gmra.mrb[4].mxu0 %vm406_vm0, %v1173_v14  ;;  %1100 = vmatmul.mubr.msk.bf16.gmra.mrb[4].mxu1 %vm406_vm0, %v1173_v14 }
  0x2e   : > { %471 = vmatprep.mubr.bf16.mxu0 %v1244_v4  ;;  %544 = vmatprep.mubr.bf16.mxu1 %v1244_v4 }
  0x30   : > { %631 = vperm.xlu0 %1164, %v621_v19   ;;  %636 = vperm.xlu1 %1165, %v622_v21  }
  0x34   : > { %641 = vperm.xlu0 %1164, %v623_v22   ;;  %646 = vperm.xlu1 %1165, %v624_v23  }
  0x35   : > { %1097 = vmatmul.mubr.msk.bf16.gmra.mrb[8].mxu0 %vm406_vm0, %v1174_v20  ;;  %1101 = vmatmul.mubr.msk.bf16.gmra.mrb[8].mxu1 %vm406_vm0, %v1174_v20 }
  0x36   : > { %481 = vmatprep.mubr.bf16.mxu0 %v1244_v4  ;;  %554 = vmatprep.mubr.bf16.mxu1 %v1244_v4 }
  0x38   : > { %651 = vperm.xlu0 %1164, %v625_v24   ;;  %656 = vperm.xlu1 %1165, %v626_v26  }
  0x3c   : > { %661 = vperm.xlu0 %1164, %v627_v27   ;;  %666 = vperm.xlu1 %1165, %v628_v28  }
  0x3d   : > { %1098 = vmatmul.mubr.msk.bf16.gmra.mrb[12].mxu0 %vm406_vm0, %v1175_v25  ;;  %1102 = vmatmul.mubr.msk.bf16.gmra.mrb[12].mxu1 %vm406_vm0, %v1175_v25 }
  0x3e   : > { %734 = vmatprep.mubr.bf16.mxu0 %v1244_v4  ;;  %807 = vmatprep.mubr.bf16.mxu1 %v1244_v4 }
  0x40   : > { %900 = vperm.xlu0 %1164, %v897_v29  }
  0x9f   : > { %v329_v30 = vpop.permute.xlu0 %328  ;;  %v339_v32 = vpop.permute.xlu1 %338 }
  0xa3   : > { %v334_v31 = vpop.permute.xlu0 %333  ;;  %v344_v57 = vpop.permute.xlu1 %343 }
  0xa7   : > { %v349_v23 = vpop.permute.xlu0 %348  ;;  %v354_v24 = vpop.permute.xlu1 %353 }
  0xf8   : > { %v453_v33 = vpop.f32.mrb[0].mxu0  ;;  %v526_v34 = vpop.f32.mrb[0].mxu1 }
  0xf9   : > { %v454_v35 = vadd.f32 %v453_v33, %v329_v30  ;;  %v527_v36 = vadd.f32 %v526_v34, %v329_v30  ;;  %v455_v37 = vpop.f32.mrb[1].mxu0  ;;  %v528_v38 = vpop.f32.mrb[1].mxu1 }
  0xfa   : > { %v456_v39 = vadd.f32 %v455_v37, %v329_v30  ;;  %v529_v40 = vadd.f32 %v528_v38, %v329_v30  ;;  %v457_v41 = vpop.f32.mrb[2].mxu0  ;;  %v530_v42 = vpop.f32.mrb[2].mxu1 }
  0xfb   : > { %v458_v43 = vadd.f32 %v457_v41, %v334_v31  ;;  %v531_v44 = vadd.f32 %v530_v42, %v334_v31  ;;  %v459_v45 = vpop.f32.mrb[3].mxu0  ;;  %v532_v46 = vpop.f32.mrb[3].mxu1  ;;  %v565_v49 = vmax.f32 %v454_v35, 0.0  ;;  %v567_v50 = vmax.f32 %v527_v36, 0.0 }
  0xfc   : > { %v460_v47 = vadd.f32 %v459_v45, %v334_v31  ;;  %v533_v48 = vadd.f32 %v532_v46, %v334_v31  ;;  %v566_v53 = vmax.f32 %v456_v39, 0.0  ;;  %v568_v54 = vmax.f32 %v529_v40, 0.0 }
  0xfd   : > { %v569_v51 = vmax.f32 %v458_v43, 0.0  ;;  %v571_v52 = vmax.f32 %v531_v44, 0.0 }
  0xfe   : > { %v570_v55 = vmax.f32 %v460_v47, 0.0  ;;  %v572_v56 = vmax.f32 %v533_v48, 0.0 }
  0xff   : > { %v605_v58 = vpack.c.bf16 %v569_v51, %v565_v49  ;;  %v607_v59 = vpack.c.bf16 %v571_v52, %v567_v50 }
 0x100   : > { %v606_v60 = vpack.c.bf16 %v570_v55, %v566_v53  ;;  %v608_v61 = vpack.c.bf16 %v572_v56, %v568_v54  ;;  %v463_v62 = vpop.f32.mrb[4].mxu0  ;;  %v536_v63 = vpop.f32.mrb[4].mxu1 }
 0x101   : > { %v464_v0 = vadd.f32 %v463_v62, %v339_v32  ;;  %v537_v1 = vadd.f32 %v536_v63, %v339_v32  ;;  %v465_v2 = vpop.f32.mrb[5].mxu0  ;;  %v538_v3 = vpop.f32.mrb[5].mxu1 }
 0x102   : > { %v466_v5 = vadd.f32 %v465_v2, %v339_v32  ;;  %v539_v6 = vadd.f32 %v538_v3, %v339_v32  ;;  %v467_v7 = vpop.f32.mrb[6].mxu0  ;;  %v540_v8 = vpop.f32.mrb[6].mxu1  ;;  %702 = vmatprep.subr.bf16.mxu0 %v606_v60  ;;  %775 = vmatprep.subr.bf16.mxu1 %v608_v61 }
 0x103   : > { %v468_v9 = vadd.f32 %v467_v7, %v344_v57  ;;  %v541_v10 = vadd.f32 %v540_v8, %v344_v57  ;;  %v469_v11 = vpop.f32.mrb[7].mxu0  ;;  %v542_v12 = vpop.f32.mrb[7].mxu1  ;;  %703 = vmatpush1.bf16.msra.mxu0 %v605_v58  ;;  %776 = vmatpush1.bf16.msra.mxu1 %v607_v59  ;;  %v573_v15 = vmax.f32 %v464_v0, 0.0  ;;  %v575_v16 = vmax.f32 %v537_v1, 0.0 }
 0x104   : > { %v470_v13 = vadd.f32 %v469_v11, %v344_v57  ;;  %v543_v14 = vadd.f32 %v542_v12, %v344_v57  ;;  %v574_v19 = vmax.f32 %v466_v5, 0.0  ;;  %v576_v20 = vmax.f32 %v539_v6, 0.0  ;;  %v359_v53 = vpop.permute.xlu0 %358  ;;  %v364_v54 = vpop.permute.xlu1 %363 }
 0x105   : > { %v577_v17 = vmax.f32 %v468_v9, 0.0  ;;  %v579_v18 = vmax.f32 %v541_v10, 0.0 }
 0x106   : > { %v578_v21 = vmax.f32 %v470_v13, 0.0  ;;  %v580_v22 = vmax.f32 %v543_v14, 0.0 }
 0x107   : > { %v609_v25 = vpack.c.bf16 %v577_v17, %v573_v15  ;;  %v611_v26 = vpack.c.bf16 %v579_v18, %v575_v16 }
 0x108   : > { %v610_v27 = vpack.c.bf16 %v578_v21, %v574_v19  ;;  %v612_v28 = vpack.c.bf16 %v580_v22, %v576_v20  ;;  %v473_v29 = vpop.f32.mrb[8].mxu0  ;;  %v546_v30 = vpop.f32.mrb[8].mxu1 }
 0x109   : > { %v474_v31 = vadd.f32 %v473_v29, %v349_v23  ;;  %v547_v32 = vadd.f32 %v546_v30, %v349_v23  ;;  %v475_v33 = vpop.f32.mrb[9].mxu0  ;;  %v548_v34 = vpop.f32.mrb[9].mxu1 }
 0x10a   : > { %v476_v35 = vadd.f32 %v475_v33, %v349_v23  ;;  %v549_v36 = vadd.f32 %v548_v34, %v349_v23  ;;  %v477_v37 = vpop.f32.mrb[10].mxu0  ;;  %v550_v38 = vpop.f32.mrb[10].mxu1  ;;  %704 = vmatprep.subr.bf16.mxu0 %v610_v27  ;;  %777 = vmatprep.subr.bf16.mxu1 %v612_v28  ;;  %v1179_v27 = vld [vmem:[%s1515_s3 + $0x18] sm:$0xff]  }
 0x10b   : > { %v478_v39 = vadd.f32 %v477_v37, %v354_v24  ;;  %v551_v40 = vadd.f32 %v550_v38, %v354_v24  ;;  %v479_v41 = vpop.f32.mrb[11].mxu0  ;;  %v552_v42 = vpop.f32.mrb[11].mxu1  ;;  %705 = vmatpush1.bf16.msra.mxu0 %v609_v25  ;;  %778 = vmatpush1.bf16.msra.mxu1 %v611_v26  ;;  %v581_v45 = vmax.f32 %v474_v31, 0.0  ;;  %v583_v46 = vmax.f32 %v547_v32, 0.0  ;;  %v1177_v25 = vld [vmem:[%s1515_s3 + $0x8] sm:$0xff]   ;;  %v1178_v26 = vld [vmem:[%s1515_s3 + $0x10] sm:$0xff]  }
 0x10c   : > { %v480_v43 = vadd.f32 %v479_v41, %v354_v24  ;;  %v553_v44 = vadd.f32 %v552_v42, %v354_v24  ;;  %v582_v49 = vmax.f32 %v476_v35, 0.0  ;;  %v584_v50 = vmax.f32 %v549_v36, 0.0  ;;  %v1176_v24 = vld [vmem:[%s1515_s3] sm:$0xff]   ;;  %v632_v28 = vpop.permute.xlu0 %631  ;;  %v637_v29 = vpop.permute.xlu1 %636 }
 0x10d   : > { %v585_v47 = vmax.f32 %v478_v39, 0.0  ;;  %v587_v48 = vmax.f32 %v551_v40, 0.0 }
 0x10e   : > { %v586_v51 = vmax.f32 %v480_v43, 0.0  ;;  %v588_v52 = vmax.f32 %v553_v44, 0.0 }
 0x10f   : > { %v613_v55 = vpack.c.bf16 %v585_v47, %v581_v45  ;;  %v615_v56 = vpack.c.bf16 %v587_v48, %v583_v46 }
 0x110   : > { %v614_v57 = vpack.c.bf16 %v586_v51, %v582_v49  ;;  %v616_v58 = vpack.c.bf16 %v588_v52, %v584_v50  ;;  %v483_v59 = vpop.f32.mrb[12].mxu0  ;;  %v556_v60 = vpop.f32.mrb[12].mxu1 }
 0x111   : > { %v484_v61 = vadd.f32 %v483_v59, %v359_v53  ;;  %v557_v62 = vadd.f32 %v556_v60, %v359_v53  ;;  %v485_v63 = vpop.f32.mrb[13].mxu0  ;;  %v558_v0 = vpop.f32.mrb[13].mxu1 }
 0x112   : > { %v486_v1 = vadd.f32 %v485_v63, %v359_v53  ;;  %v559_v2 = vadd.f32 %v558_v0, %v359_v53  ;;  %v487_v3 = vpop.f32.mrb[14].mxu0  ;;  %v560_v5 = vpop.f32.mrb[14].mxu1  ;;  %706 = vmatprep.subr.bf16.mxu0 %v614_v57  ;;  %779 = vmatprep.subr.bf16.mxu1 %v616_v58 }
 0x113   : > { %v488_v6 = vadd.f32 %v487_v3, %v364_v54  ;;  %v561_v7 = vadd.f32 %v560_v5, %v364_v54  ;;  %v489_v8 = vpop.f32.mrb[15].mxu0  ;;  %v562_v9 = vpop.f32.mrb[15].mxu1  ;;  %707 = vmatpush1.bf16.msra.mxu0 %v613_v55  ;;  %780 = vmatpush1.bf16.msra.mxu1 %v615_v56  ;;  %v589_v12 = vmax.f32 %v484_v61, 0.0  ;;  %v591_v13 = vmax.f32 %v557_v62, 0.0 }
 0x114   : > { %v490_v10 = vadd.f32 %v489_v8, %v364_v54  ;;  %v563_v11 = vadd.f32 %v562_v9, %v364_v54  ;;  %v590_v16 = vmax.f32 %v486_v1, 0.0  ;;  %v592_v17 = vmax.f32 %v559_v2, 0.0  ;;  %v642_v53 = vpop.permute.xlu0 %641  ;;  %v647_v54 = vpop.permute.xlu1 %646 }
 0x115   : > { %v593_v14 = vmax.f32 %v488_v6, 0.0  ;;  %v595_v15 = vmax.f32 %v561_v7, 0.0 }
 0x116   : > { %v594_v18 = vmax.f32 %v490_v10, 0.0  ;;  %v596_v19 = vmax.f32 %v563_v11, 0.0 }
 0x117   : > { %v617_v20 = vpack.c.bf16 %v593_v14, %v589_v12  ;;  %v619_v21 = vpack.c.bf16 %v595_v15, %v591_v13 }
 0x118   : > { %v618_v22 = vpack.c.bf16 %v594_v18, %v590_v16  ;;  %v620_v23 = vpack.c.bf16 %v596_v19, %v592_v17 }
 0x11a   : > { %708 = vmatprep.subr.bf16.mxu0 %v618_v22  ;;  %781 = vmatprep.subr.bf16.mxu1 %v620_v23 }
 0x11b   : > { %709 = vmatpush1.bf16.msra.mxu0 %v617_v20  ;;  %782 = vmatpush1.bf16.msra.mxu1 %v619_v21  ;;  %v652_v20 = vpop.permute.xlu0 %651  ;;  %v657_v21 = vpop.permute.xlu1 %656 }
 0x11e   : > { %1107 = vmatmul.mubr.msk.bf16.vlgmr.msra.gmra.mrb[16].mxu0 %vm689_vm1, %v1176_v24  ;;  %1111 = vmatmul.mubr.msk.bf16.vlgmr.msra.gmra.mrb[16].mxu1 %vm689_vm1, %v1176_v24 }
 0x11f   : > { %744 = vmatprep.mubr.bf16.mxu0 %v1244_v4  ;;  %817 = vmatprep.mubr.bf16.mxu1 %v1244_v4 }
 0x126   : > { %1108 = vmatmul.mubr.msk.bf16.gmra.mrb[20].mxu0 %vm689_vm1, %v1177_v25  ;;  %1112 = vmatmul.mubr.msk.bf16.gmra.mrb[20].mxu1 %vm689_vm1, %v1177_v25 }
 0x127   : > { %754 = vmatprep.mubr.bf16.mxu0 %v1244_v4  ;;  %827 = vmatprep.mubr.bf16.mxu1 %v1244_v4 }
 0x12e   : > { %1109 = vmatmul.mubr.msk.bf16.gmra.mrb[24].mxu0 %vm689_vm1, %v1178_v26  ;;  %1113 = vmatmul.mubr.msk.bf16.gmra.mrb[24].mxu1 %vm689_vm1, %v1178_v26 }
 0x12f   : > { %764 = vmatprep.mubr.bf16.mxu0 %v1244_v4  ;;  %837 = vmatprep.mubr.bf16.mxu1 %v1244_v4 }
 0x136   : > { %1110 = vmatmul.mubr.msk.bf16.gmra.mrb[28].mxu0 %vm689_vm1, %v1179_v27  ;;  %1114 = vmatmul.mubr.msk.bf16.gmra.mrb[28].mxu1 %vm689_vm1, %v1179_v27 }
 0x137   : > { %938 = vmatprep.mubr.bf16.mxu0 %v1244_v4  ;;  %979 = vmatprep.mubr.bf16.mxu1 %v1244_v4 }
 0x1f1   : > { %v736_v30 = vpop.f32.mrb[16].mxu0  ;;  %v809_v31 = vpop.f32.mrb[16].mxu1 }
 0x1f2   : > { %v737_v32 = vadd.f32 %v736_v30, %v632_v28  ;;  %v810_v33 = vadd.f32 %v809_v31, %v632_v28  ;;  %v738_v34 = vpop.f32.mrb[17].mxu0  ;;  %v811_v35 = vpop.f32.mrb[17].mxu1 }
 0x1f3   : > { %v739_v36 = vadd.f32 %v738_v34, %v632_v28  ;;  %v812_v37 = vadd.f32 %v811_v35, %v632_v28  ;;  %v740_v38 = vpop.f32.mrb[18].mxu0  ;;  %v813_v39 = vpop.f32.mrb[18].mxu1 }
 0x1f4   : > { %v741_v40 = vadd.f32 %v740_v38, %v637_v29  ;;  %v814_v41 = vadd.f32 %v813_v39, %v637_v29  ;;  %v742_v42 = vpop.f32.mrb[19].mxu0  ;;  %v815_v43 = vpop.f32.mrb[19].mxu1  ;;  %v848_v46 = vmax.f32 %v737_v32, 0.0  ;;  %v850_v4 = vmax.f32 %v810_v33, 0.0 }
 0x1f5   : > { %v743_v44 = vadd.f32 %v742_v42, %v637_v29  ;;  %v816_v45 = vadd.f32 %v815_v43, %v637_v29  ;;  %v849_v49 = vmax.f32 %v739_v36, 0.0  ;;  %v851_v50 = vmax.f32 %v812_v37, 0.0 }
 0x1f6   : > { %v852_v47 = vmax.f32 %v741_v40, 0.0  ;;  %v854_v48 = vmax.f32 %v814_v41, 0.0 }
 0x1f7   : > { %v853_v51 = vmax.f32 %v743_v44, 0.0  ;;  %v855_v52 = vmax.f32 %v816_v45, 0.0 }
 0x1f8   : > { %v881_v55 = vpack.c.bf16 %v852_v47, %v848_v46  ;;  %v883_v56 = vpack.c.bf16 %v854_v48, %v850_v4 }
 0x1f9   : > { %v882_v57 = vpack.c.bf16 %v853_v51, %v849_v49  ;;  %v884_v58 = vpack.c.bf16 %v855_v52, %v851_v50  ;;  %v746_v59 = vpop.f32.mrb[20].mxu0  ;;  %v819_v60 = vpop.f32.mrb[20].mxu1 }
 0x1fa   : > { %v747_v61 = vadd.f32 %v746_v59, %v642_v53  ;;  %v820_v62 = vadd.f32 %v819_v60, %v642_v53  ;;  %v748_v63 = vpop.f32.mrb[21].mxu0  ;;  %v821_v0 = vpop.f32.mrb[21].mxu1 }
 0x1fb   : > { %v749_v1 = vadd.f32 %v748_v63, %v642_v53  ;;  %v822_v2 = vadd.f32 %v821_v0, %v642_v53  ;;  %v750_v3 = vpop.f32.mrb[22].mxu0  ;;  %v823_v5 = vpop.f32.mrb[22].mxu1  ;;  %906 = vmatprep.subr.bf16.mxu0 %v882_v57  ;;  %947 = vmatprep.subr.bf16.mxu1 %v884_v58 }
 0x1fc   : > { %v751_v6 = vadd.f32 %v750_v3, %v647_v54  ;;  %v824_v7 = vadd.f32 %v823_v5, %v647_v54  ;;  %v752_v8 = vpop.f32.mrb[23].mxu0  ;;  %v825_v9 = vpop.f32.mrb[23].mxu1  ;;  %907 = vmatpush1.bf16.msra.mxu0 %v881_v55  ;;  %948 = vmatpush1.bf16.msra.mxu1 %v883_v56  ;;  %v856_v12 = vmax.f32 %v747_v61, 0.0  ;;  %v858_v13 = vmax.f32 %v820_v62, 0.0 }
 0x1fd   : > { %v753_v10 = vadd.f32 %v752_v8, %v647_v54  ;;  %v826_v11 = vadd.f32 %v825_v9, %v647_v54  ;;  %v857_v16 = vmax.f32 %v749_v1, 0.0  ;;  %v859_v17 = vmax.f32 %v822_v2, 0.0  ;;  %v662_v49 = vpop.permute.xlu0 %661  ;;  %v667_v50 = vpop.permute.xlu1 %666 }
 0x1fe   : > { %v860_v14 = vmax.f32 %v751_v6, 0.0  ;;  %v862_v15 = vmax.f32 %v824_v7, 0.0 }
 0x1ff   : > { %v861_v18 = vmax.f32 %v753_v10, 0.0  ;;  %v863_v19 = vmax.f32 %v826_v11, 0.0 }
 0x200   : > { %v885_v22 = vpack.c.bf16 %v860_v14, %v856_v12  ;;  %v887_v23 = vpack.c.bf16 %v862_v15, %v858_v13 }
 0x201   : > { %v886_v24 = vpack.c.bf16 %v861_v18, %v857_v16  ;;  %v888_v25 = vpack.c.bf16 %v863_v19, %v859_v17  ;;  %v756_v26 = vpop.f32.mrb[24].mxu0  ;;  %v829_v27 = vpop.f32.mrb[24].mxu1 }
 0x202   : > { %v757_v28 = vadd.f32 %v756_v26, %v652_v20  ;;  %v830_v29 = vadd.f32 %v829_v27, %v652_v20  ;;  %v758_v30 = vpop.f32.mrb[25].mxu0  ;;  %v831_v31 = vpop.f32.mrb[25].mxu1 }
 0x203   : > { %v759_v32 = vadd.f32 %v758_v30, %v652_v20  ;;  %v832_v33 = vadd.f32 %v831_v31, %v652_v20  ;;  %v760_v34 = vpop.f32.mrb[26].mxu0  ;;  %v833_v35 = vpop.f32.mrb[26].mxu1  ;;  %908 = vmatprep.subr.bf16.mxu0 %v886_v24  ;;  %949 = vmatprep.subr.bf16.mxu1 %v888_v25  ;;  %v880_v20 = vld [vmem:[%s1517_s5] sm:$0x3] }
 0x204   : > { %v761_v36 = vadd.f32 %v760_v34, %v657_v21  ;;  %v834_v37 = vadd.f32 %v833_v35, %v657_v21  ;;  %v762_v38 = vpop.f32.mrb[27].mxu0  ;;  %v835_v39 = vpop.f32.mrb[27].mxu1  ;;  %909 = vmatpush1.bf16.msra.mxu0 %v885_v22  ;;  %950 = vmatpush1.bf16.msra.mxu1 %v887_v23  ;;  %v864_v42 = vmax.f32 %v757_v28, 0.0  ;;  %v866_v43 = vmax.f32 %v830_v29, 0.0 }
 0x205   : > { %v763_v40 = vadd.f32 %v762_v38, %v657_v21  ;;  %v836_v41 = vadd.f32 %v835_v39, %v657_v21  ;;  %v865_v46 = vmax.f32 %v759_v32, 0.0  ;;  %v867_v4 = vmax.f32 %v832_v33, 0.0  ;;  %v901_v21 = vpop.permute.xlu0 %900 }
 0x206   : > { %v868_v44 = vmax.f32 %v761_v36, 0.0  ;;  %v870_v45 = vmax.f32 %v834_v37, 0.0 }
 0x207   : > { %v869_v47 = vmax.f32 %v763_v40, 0.0  ;;  %v871_v48 = vmax.f32 %v836_v41, 0.0 }
 0x208   : > { %v889_v51 = vpack.c.bf16 %v868_v44, %v864_v42  ;;  %v891_v52 = vpack.c.bf16 %v870_v45, %v866_v43 }
 0x209   : > { %v890_v53 = vpack.c.bf16 %v869_v47, %v865_v46  ;;  %v892_v54 = vpack.c.bf16 %v871_v48, %v867_v4  ;;  %v766_v55 = vpop.f32.mrb[28].mxu0  ;;  %v839_v56 = vpop.f32.mrb[28].mxu1 }
 0x20a   : > { %v767_v57 = vadd.f32 %v766_v55, %v662_v49  ;;  %v840_v58 = vadd.f32 %v839_v56, %v662_v49  ;;  %v768_v59 = vpop.f32.mrb[29].mxu0  ;;  %v841_v60 = vpop.f32.mrb[29].mxu1 }
 0x20b   : > { %v769_v61 = vadd.f32 %v768_v59, %v662_v49  ;;  %v842_v62 = vadd.f32 %v841_v60, %v662_v49  ;;  %v770_v63 = vpop.f32.mrb[30].mxu0  ;;  %v843_v0 = vpop.f32.mrb[30].mxu1  ;;  %910 = vmatprep.subr.bf16.mxu0 %v890_v53  ;;  %951 = vmatprep.subr.bf16.mxu1 %v892_v54 }
 0x20c   : > { %v771_v1 = vadd.f32 %v770_v63, %v667_v50  ;;  %v844_v2 = vadd.f32 %v843_v0, %v667_v50  ;;  %v772_v3 = vpop.f32.mrb[31].mxu0  ;;  %v845_v5 = vpop.f32.mrb[31].mxu1  ;;  %911 = vmatpush1.bf16.msra.mxu0 %v889_v51  ;;  %952 = vmatpush1.bf16.msra.mxu1 %v891_v52  ;;  %v872_v8 = vmax.f32 %v767_v57, 0.0  ;;  %v874_v9 = vmax.f32 %v840_v58, 0.0 }
 0x20d   : > { %v773_v6 = vadd.f32 %v772_v3, %v667_v50  ;;  %v846_v7 = vadd.f32 %v845_v5, %v667_v50  ;;  %v873_v12 = vmax.f32 %v769_v61, 0.0  ;;  %v875_v13 = vmax.f32 %v842_v62, 0.0 }
 0x20e   : > { %v876_v10 = vmax.f32 %v771_v1, 0.0  ;;  %v878_v11 = vmax.f32 %v844_v2, 0.0 }
 0x20f   : > { %v877_v14 = vmax.f32 %v773_v6, 0.0  ;;  %v879_v15 = vmax.f32 %v846_v7, 0.0 }
 0x210   : > { %v893_v16 = vpack.c.bf16 %v876_v10, %v872_v8  ;;  %v895_v17 = vpack.c.bf16 %v878_v11, %v874_v9 }
 0x211   : > { %v894_v18 = vpack.c.bf16 %v877_v14, %v873_v12  ;;  %v896_v19 = vpack.c.bf16 %v879_v15, %v875_v13 }
 0x213   : > { %912 = vmatprep.subr.bf16.mxu0 %v894_v18  ;;  %953 = vmatprep.subr.bf16.mxu1 %v896_v19 }
 0x214   : > { %913 = vmatpush1.bf16.msra.mxu0 %v893_v16  ;;  %954 = vmatpush1.bf16.msra.mxu1 %v895_v17 }
 0x217   : > { %1115 = vmatmul.mubr.msk.bf16.vlgmr.msra.gmra.mrb[32].mxu0 %vm689_vm1, %v880_v20  ;;  %1116 = vmatmul.mubr.msk.bf16.vlgmr.msra.gmra.mrb[32].mxu1 %vm689_vm1, %v880_v20 }
 0x2ea   : > { %v940_v22 = vpop.f32.mrb[32].mxu0  ;;  %v981_v23 = vpop.f32.mrb[32].mxu1 }
 0x2eb   : > { %v941_v24 = vadd.f32 %v940_v22, %v901_v21  ;;  %v982_v25 = vadd.f32 %v981_v23, %v901_v21  ;;  %v942_v26 = vpop.f32.mrb[33].mxu0  ;;  %v983_v27 = vpop.f32.mrb[33].mxu1 }
 0x2ec   : > { %v943_v28 = vadd.f32 %v942_v26, %v901_v21  ;;  %v984_v29 = vadd.f32 %v983_v27, %v901_v21  ;;  %v944_v30 = vpop.f32.mrb[34].mxu0  ;;  %v985_v31 = vpop.f32.mrb[34].mxu1 }
 0x2ed   : > { %v945_v32 = vpop.f32.mrb[35].mxu0  ;;  %v986_v33 = vpop.f32.mrb[35].mxu1 }
 0x2ee   : > { %v992_v34 = vcombine.low %v941_v24, %v943_v28  ;;  %v993_v35 = vcombine.low %v982_v25, %v984_v29 }
 0x2f0   : > { %996 = vst [vmem:[%s302_s8] sm:$0xff] %v992_v34  ;;  %997 = vst [vmem:[%s302_s8 + $0x8] sm:$0xff] %v993_v35 }
 0x2f1   : > { %1193 = shalt.err (!%p1190_p5)
}
 0x2f2   : > { %s1194_s20 = scalar_lea.hbm %s1468_s15, 256  ;;  %s1198_s23 = scalar_lea.hbm %s1519_s7, 512 }
 0x2f3   : > { %p1195_p7 = scmp.ne.s32.totalorder %s1468_s15, %s1194_s20  ;;  %p1199_p12 = scmp.lt.u32.totalorder %s1468_s15, %s1519_s7 }
 0x2f4   : > { %p1200_p13 = scmp.lt.u32.totalorder %s1198_s23, %s1194_s20  ;;  %p1202_p1 = scmp.lt.u32.totalorder %s1194_s20, %s1468_s15 }
 0x2f5   : > { %p1196_p10 = pnand %p1195_p7, %p1324_p6 }
 0x2f6   : > { %p1201_p0 = por %p1200_p13, %p1199_p12 }
 0x2f7   : > { %p1197_p11 = pneg %p1196_p10 }
 0x2f8   : > { %p1203_p2 = por %p1202_p1, %p1201_p0 }
 0x2fa   : > { %p1204_p3 = pnand %p1203_p2, %p1197_p11 }
 0x2fc   : > { %1207 = shalt.err (!%p1204_p3)
}
 0x2fd   : > { %1124 = dma.vmem_to_hbm [thread:$0]  (%p1324_p6), %s1470_s9, 256, %s1468_s15, %s999_s28  }
 0x2fe PF: > { %s1025_s13 = sand.u32 1, %s1230_s24   ;;  %p1127_p4 = pnand %p1080_p9, %p1328_p8 }
 0x2ff   : > { %s1026_s14 = scalar_lea.sflag [#allocation4], %s1025_s13 }
 0x300   : > { %1225 = dma.done.wait (!%p1127_p4), %s1026_s14, 256  }
 0x301   : > { %1227 = vsyncadd (!%p1127_p4), %s1026_s14, 4294967040  ;;  %p17_p5 = scmp.ge.s32.totalorder %s1309_s30, 4   ;;  %s1522_s24 = smov %s1234_s25 }
 0x302   : > { %s1523_s25 = smov %s1238_s26  ;;  %s1524_s26 = smov %s1322_s10 }
 0x303   : > { %s1525_s27 = smov %s1309_s30  ;;  %19 = sbr.rel (!%p17_p5) target bundleno = 3 (0x3), region = 111 }
 0x30a   :  { %1031 = vsyncpa [#allocation4], 1 }
 0x30b   :  { %1033 = vsyncpa [#allocation4 + $0x1], 1 }

</bundles_post_ra>
